<compile_context>
chip_gen: v7x
topology: tpu7x:2x2x1
jax: 0.10.0
libtpu: 0.0.40
codegen_flags: <defaults>
</compile_context>

<pallas_src>
import functools

import jax
import jax.numpy as jnp
from jax.experimental import pallas as pl
from jax.experimental.pallas import tpu as pltpu

_LANE = 128          # vreg lane width
_TK_ALIGN = 256      # v6e/v7x MXU K granularity -> keep TK a multiple of 256
_MiB = 1024 * 1024


def _round_up(x: int, m: int) -> int:
    return ((x + m - 1) // m) * m


def _vmem_budget_bytes() -> int:
    """Generation-aware VMEM budget, leaving headroom for Mosaic internals."""
    phys = 128 * _MiB                      # v5e / v6e physical VMEM per core
    try:
        info = pltpu.get_tpu_info()
        phys = int(getattr(info, "vmem_capacity_bytes", phys))
    except Exception:
        pass
    # 64 MiB parts (v7x) -> 48 MiB budget; 128 MiB parts (v5e/v6e) -> 96 MiB.
    return min((phys * 3) // 4, 96 * _MiB)


def _barlow_twins_kernel(x_ref, y_ref, o_ref,
                         num_acc, diag_acc, ssx_acc, ssy_acc,
                         *, lam: float, n: int, f_valid: int, f_total: int):
    k = pl.program_id(0)
    nk = pl.num_programs(0)
    tk = x_ref.shape[1]

    @pl.when(k == 0)
    def _init():
        num_acc[...] = jnp.zeros_like(num_acc)
        diag_acc[...] = jnp.zeros_like(diag_acc)
        ssx_acc[...] = jnp.zeros_like(ssx_acc)
        ssy_acc[...] = jnp.zeros_like(ssy_acc)

    x = x_ref[...].astype(jnp.float32)  # (n, tk)
    y = y_ref[...].astype(jnp.float32)  # (n, tk)

    # Validity mask for zero-padded feature columns (static no-op if no padding).
    if f_total > f_valid:
        col_idx = jax.lax.broadcasted_iota(jnp.int32, (1, tk), 1) + k * tk
        valid = col_idx < f_valid
    else:
        valid = None

    inv_n = 1.0 / n
    inv_nm1 = 1.0 / (n - 1)  # torch.std default: unbiased (ddof=1)

    def standardize(v):
        mean = jnp.sum(v, axis=0, keepdims=True) * inv_n
        c = v - mean
        var = jnp.sum(c * c, axis=0, keepdims=True) * inv_nm1
        inv_std = jax.lax.rsqrt(var)  # EUP on a (1, tk) row only
        if valid is not None:
            inv_std = jnp.where(valid, inv_std, 0.0)  # padded cols -> exact 0
        return c * inv_std

    xs = standardize(x)
    ys = standardize(y)

    # Cross-products on the MXU in bf16 with f32 accumulation.
    num_acc[...] += jax.lax.dot_general(
        xs.astype(jnp.bfloat16), ys.astype(jnp.bfloat16),
        (((1,), (1,)), ((), ())), preferred_element_type=jnp.float32)
    # f32 VPU accumulators: diagonal dot products and row norms.  The diagonal
    # feeds the near-cancelling (1 - C_ii) term, so it must not go through bf16.
    diag_acc[...] += jnp.sum(xs * ys, axis=1, keepdims=True)
    ssx_acc[...] += jnp.sum(xs * xs, axis=1, keepdims=True)
    ssy_acc[...] += jnp.sum(ys * ys, axis=1, keepdims=True)

    @pl.when(k == nk - 1)
    def _finalize():
        inv_nx = jax.lax.rsqrt(ssx_acc[...])           # (n, 1)
        inv_ny = jax.lax.rsqrt(ssy_acc[...])           # (n, 1)
        c_mat = num_acc[...] * (inv_nx * inv_ny.T)     # cosine-normalized (n, n)
        diag = diag_acc[...] * inv_nx * inv_ny         # f32 diag(C), (n, 1)

        sum_d = jnp.sum(diag)                          # sum(diag(C))
        sum_d2 = jnp.sum(diag * diag)                  # sum(diag(C)^2)
        red_term = jnp.sum(c_mat * c_mat) - sum_d2     # sum(offdiag(C^2))

        o_ref[0, 0] = (n - sum_d) * inv_n + red_term * (lam * inv_n)


def _input_spec(n: int, tk: int, nbuf: int) -> pl.BlockSpec:
    if nbuf > 2:
        try:
            return pl.BlockSpec((n, tk), lambda k: (0, k),
                                pipeline_mode=pl.Buffered(nbuf))
        except Exception:  # older jax without pipeline_mode -> default 2 buffers
            pass
    return pl.BlockSpec((n, tk), lambda k: (0, k))


def barlow_twins_loss(x1: jax.Array, x2: jax.Array, lam: float = 0.2,
                      *, max_tk: int | None = None) -> jax.Array:
    """Barlow Twins loss (scalar) via a Pallas TPU kernel."""
    # flatten(start_dim=1), keep the native dtype (cast happens in-kernel)
    x1 = x1.reshape(x1.shape[0], -1)
    x2 = x2.reshape(x2.shape[0], -1)
    n, f = x1.shape
    assert x2.shape == (n, f), "X1 / X2 must have matching shapes"
    assert n >= 2, "need at least 2 samples for the unbiased std"
    # NOTE: a constant (zero-variance) feature column yields rsqrt(0)=inf, which
    # matches the PyTorch reference's divide-by-zero behaviour.

    itemsize = jnp.dtype(x1.dtype).itemsize
    budget = _vmem_budget_bytes()
    slack = 4 * _MiB                                   # Mosaic internal scratch
    n_pad = _round_up(n, 8)
    acc_bytes = 4 * n_pad * n_pad + 3 * 4 * n_pad * _LANE
    stream_budget = budget - acc_bytes - slack
    assert stream_budget > 0, "batch too large for a resident (N,N) accumulator"

    f128 = _round_up(max(f, 1), _LANE)

    if ((max_tk is None or f128 <= max_tk)
            and 2 * 2 * n * f128 * itemsize <= stream_budget):
        # Single-step fast path: the whole (padded) feature axis is one tile.
        tk, nk, nbuf = f128, 1, 2
    else:
        tk_cap = stream_budget // (2 * 2 * n * itemsize)
        tk = max(_TK_ALIGN, (tk_cap // _TK_ALIGN) * _TK_ALIGN)
        if max_tk is not None:
            tk = min(tk, max(_TK_ALIGN, (max_tk // _TK_ALIGN) * _TK_ALIGN))
        tk = min(tk, _round_up(f128, _TK_ALIGN))
        nk = -(-f // tk)
        nbuf = 3 if (nk >= 3 and 2 * 3 * n * tk * itemsize <= stream_budget) else 2

    # Pad F up to a multiple of TK; padded columns are masked in the kernel.
    f_pad = nk * tk
    if f_pad != f:
        x1 = jnp.pad(x1, ((0, 0), (0, f_pad - f)))
        x2 = jnp.pad(x2, ((0, 0), (0, f_pad - f)))

    need = 2 * nbuf * n * tk * itemsize + acc_bytes + slack
    vmem_limit = int(min(budget, max(need, 16 * _MiB)))

    kernel = functools.partial(
        _barlow_twins_kernel, lam=float(lam), n=n, f_valid=f, f_total=f_pad)
    in_spec = _input_spec(n, tk, nbuf)

    out = pl.pallas_call(
        kernel,
        out_shape=jax.ShapeDtypeStruct((1, 1), jnp.float32),
        grid=(nk,),
        in_specs=[in_spec, in_spec],
        out_specs=pl.BlockSpec(memory_space=pltpu.MemorySpace.SMEM),
        scratch_shapes=[
            pltpu.VMEM((n, n), jnp.float32),   # <xs_i, ys_j> accumulator
            pltpu.VMEM((n, 1), jnp.float32),   # f32 diagonal accumulator
            pltpu.VMEM((n, 1), jnp.float32),   # sum of squares, x
            pltpu.VMEM((n, 1), jnp.float32),   # sum of squares, y
        ],
        compiler_params=pltpu.CompilerParams(
            dimension_semantics=("arbitrary",),   # feature axis is a reduction
            vmem_limit_bytes=vmem_limit,
        ),
    )(x1, x2)
    return out[0, 0]


def _reference_loss(x1, x2, lam=0.2):
    """Pure-JAX reference mirroring the PyTorch math (for sanity checking)."""
    x1 = x1.reshape(x1.shape[0], -1).astype(jnp.float32)
    x2 = x2.reshape(x2.shape[0], -1).astype(jnp.float32)
    n = x1.shape[0]

    def std_(v):
        return (v - v.mean(0, keepdims=True)) / v.std(0, keepdims=True, ddof=1)

    xs, ys = std_(x1), std_(x2)
    num = xs @ ys.T
    denom = jnp.linalg.norm(xs, axis=1)[:, None] * jnp.linalg.norm(ys, axis=1)[None, :]
    C = num / denom
    inv_term = jnp.sum(jnp.diag(1.0 - C))
    red_sq = C**2
    red_sq = red_sq - jnp.diag(jnp.diag(red_sq))
    return inv_term / n + jnp.sum(red_sq) / n * lam


if __name__ == "__main__":
    key = jax.random.PRNGKey(0)
    k1, k2, k3, k4 = jax.random.split(key, 4)

    # Test 1: (8, 4, 16, 16) -> (8, 1024); collapses to a single grid step.
    x1 = jax.random.normal(k1, (8, 4, 16, 16), dtype=jnp.float32)
    x2 = x1 + 0.1 * jax.random.normal(k2, (8, 4, 16, 16), dtype=jnp.float32)
    loss1 = jax.block_until_ready(barlow_twins_loss(x1, x2, lam=0.2))
    ref1 = jax.block_until_ready(_reference_loss(x1, x2, lam=0.2))
    assert jnp.isfinite(loss1), "kernel produced non-finite loss (test 1)"
    # bf16 MXU off-diagonals trade ~1e-3 relative accuracy for speed.
    assert jnp.allclose(loss1, ref1, rtol=7e-2, atol=3e-3), (loss1, ref1)

    # Test 2: (8, 5, 12, 12) -> (8, 720); padded + masked tail, single step.
    y1 = jax.random.normal(k3, (8, 5, 12, 12), dtype=jnp.float32)
    y2 = y1 + 0.1 * jax.random.normal(k4, (8, 5, 12, 12), dtype=jnp.float32)
    loss2 = jax.block_until_ready(barlow_twins_loss(y1, y2, lam=0.2))
    ref2 = jax.block_until_ready(_reference_loss(y1, y2, lam=0.2))
    assert jnp.isfinite(loss2), "kernel produced non-finite loss (test 2)"
    assert jnp.allclose(loss2, ref2, rtol=7e-2, atol=3e-3), (loss2, ref2)

    # Test 3: force the multi-step reduction grid (TK=256 -> 3 steps, padded to
    # 768, triple-buffered inputs) and check it matches the single-step result.
    loss3 = jax.block_until_ready(barlow_twins_loss(y1, y2, lam=0.2, max_tk=256))
    assert jnp.isfinite(loss3), "kernel produced non-finite loss (test 3)"
    assert jnp.allclose(loss3, ref2, rtol=7e-2, atol=3e-3), (loss3, ref2)

    print("KERNEL_OK")
</pallas_src>

<mosaic_0001>
module attributes {stable_mosaic.version = 11 : i64} {
  func.func @_barlow_twins_kernel(%arg0: i32, %arg1: memref<8x1024xf32, #tpu.memory_space<vmem>>, %arg2: memref<8x1024xf32, #tpu.memory_space<vmem>>, %arg3: memref<1x1xf32, #tpu.memory_space<smem>>, %arg4: memref<8x8xf32, #tpu.memory_space<vmem>>, %arg5: memref<8x1xf32, #tpu.memory_space<vmem>>, %arg6: memref<8x1xf32, #tpu.memory_space<vmem>>, %arg7: memref<8x1xf32, #tpu.memory_space<vmem>>) attributes {dimension_semantics = [#tpu.dimension_semantics<arbitrary>], iteration_bounds = array<i64: 1>, scalar_prefetch = 0 : i64, scratch_operands = 4 : i64, tpu.core_type = #tpu.core_type<tc>, window_params = [{transform_indices = @transform_0, window_bounds = array<i64: 8, 1024>}, {transform_indices = @transform_1, window_bounds = array<i64: 8, 1024>}, {transform_indices = @transform_2, window_bounds = array<i64: 1, 1>}]} {
    %c0_i32 = arith.constant 0 : i32
    %0 = arith.cmpi eq, %arg0, %c0_i32 : i32
    %1 = arith.extui %0 : i1 to i32
    %c0_i32_0 = arith.constant 0 : i32
    %2 = arith.cmpi ne, %1, %c0_i32_0 : i32
    scf.if %2 {
      %cst_33 = arith.constant 0.000000e+00 : f32
      %60 = vector.broadcast %cst_33 : f32 to vector<8x8xf32>
      %c0_34 = arith.constant 0 : index
      %c0_35 = arith.constant 0 : index
      %61 = vector.load %arg4[%c0_34, %c0_35] : memref<8x8xf32, #tpu.memory_space<vmem>>, vector<8x8xf32>
      tpu.vector_store %arg4[%c0_34, %c0_35], %60 {strides = array<i32>} : memref<8x8xf32, #tpu.memory_space<vmem>>, vector<8x8xf32>,
      %cst_36 = arith.constant 0.000000e+00 : f32
      %62 = vector.broadcast %cst_36 : f32 to vector<8x1xf32>
      %c0_37 = arith.constant 0 : index
      %c0_38 = arith.constant 0 : index
      %63 = vector.load %arg5[%c0_37, %c0_38] : memref<8x1xf32, #tpu.memory_space<vmem>>, vector<8x1xf32>
      tpu.vector_store %arg5[%c0_37, %c0_38], %62 {strides = array<i32>} : memref<8x1xf32, #tpu.memory_space<vmem>>, vector<8x1xf32>,
      %cst_39 = arith.constant 0.000000e+00 : f32
      %64 = vector.broadcast %cst_39 : f32 to vector<8x1xf32>
      %c0_40 = arith.constant 0 : index
      %c0_41 = arith.constant 0 : index
      %65 = vector.load %arg6[%c0_40, %c0_41] : memref<8x1xf32, #tpu.memory_space<vmem>>, vector<8x1xf32>
      tpu.vector_store %arg6[%c0_40, %c0_41], %64 {strides = array<i32>} : memref<8x1xf32, #tpu.memory_space<vmem>>, vector<8x1xf32>,
      %cst_42 = arith.constant 0.000000e+00 : f32
      %66 = vector.broadcast %cst_42 : f32 to vector<8x1xf32>
      %c0_43 = arith.constant 0 : index
      %c0_44 = arith.constant 0 : index
      %67 = vector.load %arg7[%c0_43, %c0_44] : memref<8x1xf32, #tpu.memory_space<vmem>>, vector<8x1xf32>
      tpu.vector_store %arg7[%c0_43, %c0_44], %66 {strides = array<i32>} : memref<8x1xf32, #tpu.memory_space<vmem>>, vector<8x1xf32>,
    } else {
    }
    %c0 = arith.constant 0 : index
    %c0_1 = arith.constant 0 : index
    %3 = vector.load %arg1[%c0, %c0_1] : memref<8x1024xf32, #tpu.memory_space<vmem>>, vector<8x1024xf32>
    %c0_2 = arith.constant 0 : index
    %c0_3 = arith.constant 0 : index
    %4 = vector.load %arg2[%c0_2, %c0_3] : memref<8x1024xf32, #tpu.memory_space<vmem>>, vector<8x1024xf32>
    %cst = arith.constant dense<0.000000e+00> : vector<1024xf32>
    %5 = vector.multi_reduction <add>, %3, %cst [0] : vector<8x1024xf32> to vector<1024xf32>
    %6 = vector.shape_cast %5 : vector<1024xf32> to vector<1x1024xf32>
    %cst_4 = arith.constant 1.250000e-01 : f32
    %7 = vector.broadcast %cst_4 : f32 to vector<1x1024xf32>
    %8 = arith.mulf %6, %7 : vector<1x1024xf32>
    %9 = vector.broadcast %8 : vector<1x1024xf32> to vector<8x1024xf32>
    %10 = arith.subf %3, %9 : vector<8x1024xf32>
    %11 = arith.mulf %10, %10 : vector<8x1024xf32>
    %cst_5 = arith.constant dense<0.000000e+00> : vector<1024xf32>
    %12 = vector.multi_reduction <add>, %11, %cst_5 [0] : vector<8x1024xf32> to vector<1024xf32>
    %13 = vector.shape_cast %12 : vector<1024xf32> to vector<1x1024xf32>
    %cst_6 = arith.constant 0.142857149 : f32
    %14 = vector.broadcast %cst_6 : f32 to vector<1x1024xf32>
    %15 = arith.mulf %13, %14 : vector<1x1024xf32>
    %16 = math.rsqrt %15 : vector<1x1024xf32>
    %17 = vector.broadcast %16 : vector<1x1024xf32> to vector<8x1024xf32>
    %18 = arith.mulf %10, %17 : vector<8x1024xf32>
    %cst_7 = arith.constant dense<0.000000e+00> : vector<1024xf32>
    %19 = vector.multi_reduction <add>, %4, %cst_7 [0] : vector<8x1024xf32> to vector<1024xf32>
    %20 = vector.shape_cast %19 : vector<1024xf32> to vector<1x1024xf32>
    %cst_8 = arith.constant 1.250000e-01 : f32
    %21 = vector.broadcast %cst_8 : f32 to vector<1x1024xf32>
    %22 = arith.mulf %20, %21 : vector<1x1024xf32>
    %23 = vector.broadcast %22 : vector<1x1024xf32> to vector<8x1024xf32>
    %24 = arith.subf %4, %23 : vector<8x1024xf32>
    %25 = arith.mulf %24, %24 : vector<8x1024xf32>
    %cst_9 = arith.constant dense<0.000000e+00> : vector<1024xf32>
    %26 = vector.multi_reduction <add>, %25, %cst_9 [0] : vector<8x1024xf32> to vector<1024xf32>
    %27 = vector.shape_cast %26 : vector<1024xf32> to vector<1x1024xf32>
    %cst_10 = arith.constant 0.142857149 : f32
    %28 = vector.broadcast %cst_10 : f32 to vector<1x1024xf32>
    %29 = arith.mulf %27, %28 : vector<1x1024xf32>
    %30 = math.rsqrt %29 : vector<1x1024xf32>
    %31 = vector.broadcast %30 : vector<1x1024xf32> to vector<8x1024xf32>
    %32 = arith.mulf %24, %31 : vector<8x1024xf32>
    %c0_11 = arith.constant 0 : index
    %c0_12 = arith.constant 0 : index
    %33 = vector.load %arg4[%c0_11, %c0_12] : memref<8x8xf32, #tpu.memory_space<vmem>>, vector<8x8xf32>
    %34 = arith.truncf %18 : vector<8x1024xf32> to vector<8x1024xbf16>
    %35 = arith.truncf %32 : vector<8x1024xf32> to vector<8x1024xbf16>
    %cst_13 = arith.constant dense<0.000000e+00> : vector<8x8xf32>
    %36 = tpu.matmul %34, %35, %cst_13 {dimension_numbers = #tpu.dot_dimension_numbers<[1], [1], [0], [0], [0, 0, 1, 0], [], []>} : vector<8x1024xbf16>, vector<8x1024xbf16>, vector<8x8xf32> -> vector<8x8xf32>
    %37 = arith.addf %33, %36 : vector<8x8xf32>
    %c0_14 = arith.constant 0 : index
    %c0_15 = arith.constant 0 : index
    %38 = vector.load %arg4[%c0_14, %c0_15] : memref<8x8xf32, #tpu.memory_space<vmem>>, vector<8x8xf32>
    tpu.vector_store %arg4[%c0_14, %c0_15], %37 {strides = array<i32>} : memref<8x8xf32, #tpu.memory_space<vmem>>, vector<8x8xf32>,
    %c0_16 = arith.constant 0 : index
    %c0_17 = arith.constant 0 : index
    %39 = vector.load %arg5[%c0_16, %c0_17] : memref<8x1xf32, #tpu.memory_space<vmem>>, vector<8x1xf32>
    %40 = arith.mulf %18, %32 : vector<8x1024xf32>
    %cst_18 = arith.constant dense<0.000000e+00> : vector<8xf32>
    %41 = vector.multi_reduction <add>, %40, %cst_18 [1] : vector<8x1024xf32> to vector<8xf32>
    %42 = vector.shape_cast %41 : vector<8xf32> to vector<8x1xf32>
    %43 = arith.addf %39, %42 : vector<8x1xf32>
    %c0_19 = arith.constant 0 : index
    %c0_20 = arith.constant 0 : index
    %44 = vector.load %arg5[%c0_19, %c0_20] : memref<8x1xf32, #tpu.memory_space<vmem>>, vector<8x1xf32>
    tpu.vector_store %arg5[%c0_19, %c0_20], %43 {strides = array<i32>} : memref<8x1xf32, #tpu.memory_space<vmem>>, vector<8x1xf32>,
    %c0_21 = arith.constant 0 : index
    %c0_22 = arith.constant 0 : index
    %45 = vector.load %arg6[%c0_21, %c0_22] : memref<8x1xf32, #tpu.memory_space<vmem>>, vector<8x1xf32>
    %46 = arith.mulf %18, %18 : vector<8x1024xf32>
    %cst_23 = arith.constant dense<0.000000e+00> : vector<8xf32>
    %47 = vector.multi_reduction <add>, %46, %cst_23 [1] : vector<8x1024xf32> to vector<8xf32>
    %48 = vector.shape_cast %47 : vector<8xf32> to vector<8x1xf32>
    %49 = arith.addf %45, %48 : vector<8x1xf32>
    %c0_24 = arith.constant 0 : index
    %c0_25 = arith.constant 0 : index
    %50 = vector.load %arg6[%c0_24, %c0_25] : memref<8x1xf32, #tpu.memory_space<vmem>>, vector<8x1xf32>
    tpu.vector_store %arg6[%c0_24, %c0_25], %49 {strides = array<i32>} : memref<8x1xf32, #tpu.memory_space<vmem>>, vector<8x1xf32>,
    %c0_26 = arith.constant 0 : index
    %c0_27 = arith.constant 0 : index
    %51 = vector.load %arg7[%c0_26, %c0_27] : memref<8x1xf32, #tpu.memory_space<vmem>>, vector<8x1xf32>
    %52 = arith.mulf %32, %32 : vector<8x1024xf32>
    %cst_28 = arith.constant dense<0.000000e+00> : vector<8xf32>
    %53 = vector.multi_reduction <add>, %52, %cst_28 [1] : vector<8x1024xf32> to vector<8xf32>
    %54 = vector.shape_cast %53 : vector<8xf32> to vector<8x1xf32>
    %55 = arith.addf %51, %54 : vector<8x1xf32>
    %c0_29 = arith.constant 0 : index
    %c0_30 = arith.constant 0 : index
    %56 = vector.load %arg7[%c0_29, %c0_30] : memref<8x1xf32, #tpu.memory_space<vmem>>, vector<8x1xf32>
    tpu.vector_store %arg7[%c0_29, %c0_30], %55 {strides = array<i32>} : memref<8x1xf32, #tpu.memory_space<vmem>>, vector<8x1xf32>,
    %c0_i32_31 = arith.constant 0 : i32
    %57 = arith.cmpi eq, %arg0, %c0_i32_31 : i32
    %58 = arith.extui %57 : i1 to i32
    %c0_i32_32 = arith.constant 0 : i32
    %59 = arith.cmpi ne, %58, %c0_i32_32 : i32
    scf.if %59 {
      %c0_33 = arith.constant 0 : index
      %c0_34 = arith.constant 0 : index
      %60 = vector.load %arg6[%c0_33, %c0_34] : memref<8x1xf32, #tpu.memory_space<vmem>>, vector<8x1xf32>
      %61 = math.rsqrt %60 : vector<8x1xf32>
      %c0_35 = arith.constant 0 : index
      %c0_36 = arith.constant 0 : index
      %62 = vector.load %arg7[%c0_35, %c0_36] : memref<8x1xf32, #tpu.memory_space<vmem>>, vector<8x1xf32>
      %63 = math.rsqrt %62 : vector<8x1xf32>
      %c0_37 = arith.constant 0 : index
      %c0_38 = arith.constant 0 : index
      %64 = vector.load %arg4[%c0_37, %c0_38] : memref<8x8xf32, #tpu.memory_space<vmem>>, vector<8x8xf32>
      %65 = tpu.transpose %63, [1, 0] : vector<8x1xf32> -> vector<1x8xf32>
      %66 = vector.broadcast %61 : vector<8x1xf32> to vector<8x8xf32>
      %67 = vector.broadcast %65 : vector<1x8xf32> to vector<8x8xf32>
      %68 = arith.mulf %66, %67 : vector<8x8xf32>
      %69 = arith.mulf %64, %68 : vector<8x8xf32>
      %c0_39 = arith.constant 0 : index
      %c0_40 = arith.constant 0 : index
      %70 = vector.load %arg5[%c0_39, %c0_40] : memref<8x1xf32, #tpu.memory_space<vmem>>, vector<8x1xf32>
      %71 = arith.mulf %70, %61 : vector<8x1xf32>
      %72 = arith.mulf %71, %63 : vector<8x1xf32>
      %73 = vector.shape_cast %72 : vector<8x1xf32> to vector<1x8x1xf32>
      %cst_41 = arith.constant dense<0.000000e+00> : vector<1xf32>
      %74 = vector.multi_reduction <add>, %73, %cst_41 [1, 2] : vector<1x8x1xf32> to vector<1xf32>
      %75 = vector.shape_cast %74 : vector<1xf32> to vector<1x1x1xf32>
      %76 = vector.extract %75[0, 0, 0] : f32 from vector<1x1x1xf32>
      %77 = arith.mulf %72, %72 : vector<8x1xf32>
      %78 = vector.shape_cast %77 : vector<8x1xf32> to vector<1x8x1xf32>
      %cst_42 = arith.constant dense<0.000000e+00> : vector<1xf32>
      %79 = vector.multi_reduction <add>, %78, %cst_42 [1, 2] : vector<1x8x1xf32> to vector<1xf32>
      %80 = vector.shape_cast %79 : vector<1xf32> to vector<1x1x1xf32>
      %81 = vector.extract %80[0, 0, 0] : f32 from vector<1x1x1xf32>
      %82 = arith.mulf %69, %69 : vector<8x8xf32>
      %83 = vector.shape_cast %82 : vector<8x8xf32> to vector<1x8x8xf32>
      %cst_43 = arith.constant dense<0.000000e+00> : vector<1xf32>
      %84 = vector.multi_reduction <add>, %83, %cst_43 [1, 2] : vector<1x8x8xf32> to vector<1xf32>
      %85 = vector.shape_cast %84 : vector<1xf32> to vector<1x1x1xf32>
      %86 = vector.extract %85[0, 0, 0] : f32 from vector<1x1x1xf32>
      %87 = arith.subf %86, %81 : f32
      %cst_44 = arith.constant 8.000000e+00 : f32
      %88 = arith.subf %cst_44, %76 : f32
      %cst_45 = arith.constant 1.250000e-01 : f32
      %89 = arith.mulf %88, %cst_45 : f32
      %cst_46 = arith.constant 2.500000e-02 : f32
      %90 = arith.mulf %87, %cst_46 : f32
      %91 = arith.addf %89, %90 : f32
      %c0_47 = arith.constant 0 : index
      %c0_48 = arith.constant 0 : index
      %92 = memref.load %arg3[%c0_47, %c0_48] : memref<1x1xf32, #tpu.memory_space<smem>>
      memref.store %91, %arg3[%c0_47, %c0_48] : memref<1x1xf32, #tpu.memory_space<smem>>
    } else {
    }
    return
  }
  func.func @transform_0(%arg0: i32) -> (i32, i32) {
    %c0_i32 = arith.constant 0 : i32
    %c0_i32_0 = arith.constant 0 : i32
    return %c0_i32, %arg0 : i32, i32
  }
  func.func @transform_1(%arg0: i32) -> (i32, i32) {
    %c0_i32 = arith.constant 0 : i32
    %c0_i32_0 = arith.constant 0 : i32
    return %c0_i32, %arg0 : i32, i32
  }
  func.func @transform_2(%arg0: i32) -> (i32, i32) {
    %c0_i32 = arith.constant 0 : i32
    %c0_i32_0 = arith.constant 0 : i32
    %c0_i32_1 = arith.constant 0 : i32
    return %c0_i32, %c0_i32_0 : i32, i32
  }
}

</mosaic_0001>

<bundles_post_ra>
// kernel: tpu_custom_call.1
= control target key start
LH: loop header
LB: loop body
LE: loop exit
PB: predicated region body
PF: predicated region fallthrough
CT: control target
= control target key end

     0   :  { %7 = vsyncpa [#allocation7], 0  ;;  %s1091_s0 = inlined_call_operand.hbm [shape: f32[8,1024], index: 0, kind: input, shape index: {}]   ;;  %s1092_s1 = inlined_call_operand.hbm [shape: f32[8,1024], index: 1, kind: input, shape index: {}]   ;;  %s1093_s2 = inlined_call_operand.hbm [shape: f32[1,1], index: 2, kind: output, shape index: {}]  }
   0x1   :  { %8 = vsyncpa [#allocation10], 0 }
   0x2   :  { %9 = vsyncpa [#allocation8], 0  ;;  %s809_s9 = smov [#allocation6]   ;;  %s810_s11 = smov [#allocation9]  }
   0x3   :  { %s16_s10 = sshll.u32 %s809_s9, 4  ;;  %s26_s12 = sshll.u32 %s810_s11, 4  ;;  %s17_s10 = int_to_ptr.vmem [resolvable:$true] %s16_s10  ;;  %s27_s12 = int_to_ptr.vmem [resolvable:$true] %s26_s12 }
   0x4   :  { %s749_s15 = scalar_lea.hbm %s1091_s0, 1024 }
   0x5   :  { %p750_p0 = scmp.ne.s32.totalorder %s1091_s0, %s749_s15  ;;  %p753_p1 = scmp.lt.u32.totalorder %s749_s15, %s1091_s0 }
   0x7   :  { %p755_p2 = pnand %p753_p1, %p750_p0 }
   0x9   :  { %758 = shalt.err (!%p755_p2)
}
   0xa   :  { %s759_s20 = scalar_lea.vmem %s17_s10, 1024  ;;  %p764_p4 = scmp.lt.s32.totalorder %s17_s10, %s17_s10 }
   0xb   :  { %p760_p3 = scmp.ne.s32.totalorder %s17_s10, %s759_s20  ;;  %p765_p5 = scmp.lt.s32.totalorder %s759_s20, %s759_s20 }
   0xd   :  { %p766_p6 = por %p765_p5, %p764_p4 }
   0xf   :  { %p767_p7 = pnand %p766_p6, %p760_p3 }
  0x11   :  { %770 = shalt.err (!%p767_p7)
}
  0x12   :  { %19 = dma.hbm_to_vmem [thread:$0]  %s1091_s0, 1024, %s17_s10, [#allocation7]  }
  0x13   :  { %s771_s25 = scalar_lea.hbm %s1092_s1, 1024 }
  0x14   :  { %p772_p8 = scmp.ne.s32.totalorder %s1092_s1, %s771_s25  ;;  %p775_p9 = scmp.lt.u32.totalorder %s771_s25, %s1092_s1 }
  0x16   :  { %p777_p10 = pnand %p775_p9, %p772_p8 }
  0x18   :  { %780 = shalt.err (!%p777_p10)
}
  0x19   :  { %s781_s30 = scalar_lea.vmem %s27_s12, 1024  ;;  %p786_p12 = scmp.lt.s32.totalorder %s27_s12, %s27_s12 }
  0x1a   :  { %p782_p11 = scmp.ne.s32.totalorder %s27_s12, %s781_s30  ;;  %p787_p13 = scmp.lt.s32.totalorder %s781_s30, %s781_s30 }
  0x1c   :  { %p788_p0 = por %p787_p13, %p786_p12 }
  0x1e   :  { %p789_p1 = pnand %p788_p0, %p782_p11 }
  0x20   :  { %792 = shalt.err (!%p789_p1)
}
  0x21   :  { %29 = dma.hbm_to_vmem [thread:$0]  %s1092_s1, 1024, %s27_s12, [#allocation10]  }
  0x22   :  { %803 = dma.done.wait [#allocation7], 1024  }
  0x23   :  { %804 = vsyncadd [#allocation7], 4294966272 }
  0x24   :  { %805 = dma.done.wait [#allocation10], 1024  }
  0x25   :  { %806 = vsyncadd [#allocation10], 4294966272  ;;  %vm43_vm0 = vcmask 7168   ;;  %v811_v0 = vmov 0.0   ;;  %v859_v1 = vld [vmem:[#allocation6] sm:$0xff]  ;;  %v861_v2 = vld [vmem:[#allocation6 + $0x8] sm:$0xff] }
  0x26   :  { %45 = vst.msk [vmem:[#allocation4] sm:$0xff] %vm43_vm0, %v811_v0  ;;  %44 = vst.msk [vmem:[#allocation3] sm:$0xff] %vm43_vm0, %v811_v0  ;;  %v863_v3 = vld [vmem:[#allocation6 + $0x10] sm:$0xff]  ;;  %v865_v4 = vld [vmem:[#allocation6 + $0x18] sm:$0xff]  ;;  %v63_v7 = vrot.slane %v859_v1, 4  ;;  %v69_v8 = vrot.slane %v861_v2, 4 }
  0x27   :  { %46 = vst.msk [vmem:[#allocation5] sm:$0xff] %vm43_vm0, %v811_v0  ;;  %v867_v5 = vld [vmem:[#allocation6 + $0x20] sm:$0xff]  ;;  %v869_v6 = vld [vmem:[#allocation6 + $0x28] sm:$0xff]  ;;  %v75_v9 = vrot.slane %v863_v3, 4  ;;  %v53_v10 = vld [vmem:[#allocation6 + $0x30] sm:$0xff]  ;;  %v81_v12 = vrot.slane %v865_v4, 4 }
  0x28   :  { %v874_v11 = vld [vmem:[#allocation6 + $0x38] sm:$0xff]  ;;  %v87_v13 = vrot.slane %v867_v5, 4  ;;  %v93_v14 = vrot.slane %v869_v6, 4  ;;  %v64_v15 = vadd.f32 %v63_v7, %v859_v1  ;;  %v70_v16 = vadd.f32 %v69_v8, %v861_v2  ;;  %s793_s13 = scalar_lea.hbm %s1093_s2, 16 }
  0x29   :  { %v76_v17 = vadd.f32 %v75_v9, %v863_v3  ;;  %v99_v18 = vrot.slane %v53_v10, 4  ;;  %v82_v19 = vadd.f32 %v81_v12, %v865_v4  ;;  %v105_v22 = vrot.slane %v874_v11, 4  ;;  %p794_p2 = scmp.ne.s32.totalorder %s1093_s2, %s793_s13  ;;  %p797_p3 = scmp.lt.u32.totalorder %s793_s13, %s1093_s2 }
  0x2a   :  { %v88_v20 = vadd.f32 %v87_v13, %v867_v5  ;;  %v94_v21 = vadd.f32 %v93_v14, %v869_v6  ;;  %v65_v23 = vrot.slane %v64_v15, 2  ;;  %v71_v24 = vrot.slane %v70_v16, 2 }
  0x2b   :  { %v77_v25 = vrot.slane %v76_v17, 2  ;;  %v100_v26 = vadd.f32 %v99_v18, %v53_v10  ;;  %v83_v27 = vrot.slane %v82_v19, 2  ;;  %v106_v30 = vadd.f32 %v105_v22, %v874_v11  ;;  %p799_p4 = pnand %p797_p3, %p794_p2 }
  0x2c   :  { %v89_v28 = vrot.slane %v88_v20, 2  ;;  %v95_v29 = vrot.slane %v94_v21, 2  ;;  %v66_v31 = vadd.f32 %v65_v23, %v64_v15  ;;  %v72_v32 = vadd.f32 %v71_v24, %v70_v16 }
  0x2d   :  { %v78_v33 = vadd.f32 %v77_v25, %v76_v17  ;;  %v101_v34 = vrot.slane %v100_v26, 2  ;;  %v84_v35 = vadd.f32 %v83_v27, %v82_v19  ;;  %v107_v38 = vrot.slane %v106_v30, 2 }
  0x2e   :  { %v90_v36 = vadd.f32 %v89_v28, %v88_v20  ;;  %v96_v37 = vadd.f32 %v95_v29, %v94_v21  ;;  %v67_v39 = vrot.slane %v66_v31, 1  ;;  %v73_v40 = vrot.slane %v72_v32, 1 }
  0x2f   :  { %v79_v41 = vrot.slane %v78_v33, 1  ;;  %v102_v42 = vadd.f32 %v101_v34, %v100_v26  ;;  %v85_v43 = vrot.slane %v84_v35, 1  ;;  %v108_v46 = vadd.f32 %v107_v38, %v106_v30 }
  0x30   :  { %v91_v44 = vrot.slane %v90_v36, 1  ;;  %v97_v45 = vrot.slane %v96_v37, 1  ;;  %v68_v47 = vadd.f32 %v67_v39, %v66_v31  ;;  %v74_v48 = vadd.f32 %v73_v40, %v72_v32 }
  0x31   :  { %v80_v49 = vadd.f32 %v79_v41, %v78_v33  ;;  %v103_v50 = vrot.slane %v102_v42, 1  ;;  %v86_v51 = vadd.f32 %v85_v43, %v84_v35  ;;  %v109_v54 = vrot.slane %v108_v46, 1 }
  0x32   :  { %v92_v52 = vadd.f32 %v91_v44, %v90_v36  ;;  %v98_v53 = vadd.f32 %v97_v45, %v96_v37  ;;  %v111_v56 = vmul.f32 0.125, %v68_v47  ;;  %v112_v57 = vmul.f32 0.125, %v74_v48 }
  0x33   :  { %v104_v55 = vadd.f32 %v103_v50, %v102_v42  ;;  %v113_v58 = vmul.f32 0.125, %v80_v49  ;;  %v110_v59 = vadd.f32 %v109_v54, %v108_v46  ;;  %v114_v60 = vmul.f32 0.125, %v86_v51 }
  0x34   :  { %v115_v61 = vmul.f32 0.125, %v92_v52  ;;  %v116_v62 = vmul.f32 0.125, %v98_v53  ;;  %v888_v7 = vsub.f32 %v859_v1, %v111_v56  ;;  %v891_v8 = vsub.f32 %v861_v2, %v112_v57 }
  0x35   :  { %v117_v63 = vmul.f32 0.125, %v104_v55  ;;  %v894_v9 = vsub.f32 %v863_v3, %v113_v58  ;;  %v118_v12 = vmul.f32 0.125, %v110_v59  ;;  %v897_v13 = vsub.f32 %v865_v4, %v114_v60  ;;  %v926_v60 = vld [vmem:[#allocation9] sm:$0xff] }
  0x36   :  { %v900_v14 = vsub.f32 %v867_v5, %v115_v61  ;;  %v903_v15 = vsub.f32 %v869_v6, %v116_v62  ;;  %v127_v1 = vmul.f32 %v888_v7, %v888_v7  ;;  %v128_v2 = vmul.f32 %v891_v8, %v891_v8  ;;  %v928_v61 = vld [vmem:[#allocation9 + $0x8] sm:$0xff] }
  0x37   :  { %v905_v16 = vsub.f32 %v53_v10, %v117_v63  ;;  %v129_v3 = vmul.f32 %v894_v9, %v894_v9  ;;  %v914_v4 = vsub.f32 %v874_v11, %v118_v12  ;;  %v130_v5 = vmul.f32 %v897_v13, %v897_v13 }
  0x38   :  { %v131_v6 = vmul.f32 %v900_v14, %v900_v14  ;;  %v132_v10 = vmul.f32 %v903_v15, %v903_v15  ;;  %v135_v18 = vrot.slane %v127_v1, 4  ;;  %v141_v19 = vrot.slane %v128_v2, 4 }
  0x39   :  { %v133_v17 = vmul.f32 %v905_v16, %v905_v16  ;;  %v147_v20 = vrot.slane %v129_v3, 4  ;;  %v134_v21 = vmul.f32 %v914_v4, %v914_v4  ;;  %v153_v11 = vrot.slane %v130_v5, 4 }
  0x3a   :  { %v159_v22 = vrot.slane %v131_v6, 4  ;;  %v165_v23 = vrot.slane %v132_v10, 4  ;;  %v136_v24 = vadd.f32 %v135_v18, %v127_v1  ;;  %v142_v25 = vadd.f32 %v141_v19, %v128_v2  ;;  %v930_v2 = vld [vmem:[#allocation9 + $0x10] sm:$0xff] }
  0x3b   :  { %v148_v26 = vadd.f32 %v147_v20, %v129_v3  ;;  %v171_v27 = vrot.slane %v133_v17, 4  ;;  %v154_v28 = vadd.f32 %v153_v11, %v130_v5  ;;  %v177_v31 = vrot.slane %v134_v21, 4  ;;  %v932_v3 = vld [vmem:[#allocation9 + $0x18] sm:$0xff]  ;;  %v934_v5 = vld [vmem:[#allocation9 + $0x20] sm:$0xff] }
  0x3c   :  { %v160_v29 = vadd.f32 %v159_v22, %v131_v6  ;;  %v166_v30 = vadd.f32 %v165_v23, %v132_v10  ;;  %v137_v32 = vrot.slane %v136_v24, 2  ;;  %v143_v33 = vrot.slane %v142_v25, 2  ;;  %v936_v23 = vld [vmem:[#allocation9 + $0x28] sm:$0xff] }
  0x3d   :  { %v149_v34 = vrot.slane %v148_v26, 2  ;;  %v172_v35 = vadd.f32 %v171_v27, %v133_v17  ;;  %v155_v36 = vrot.slane %v154_v28, 2  ;;  %v178_v39 = vadd.f32 %v177_v31, %v134_v21 }
  0x3e   :  { %v161_v37 = vrot.slane %v160_v29, 2  ;;  %v167_v38 = vrot.slane %v166_v30, 2  ;;  %v138_v40 = vadd.f32 %v137_v32, %v136_v24  ;;  %v144_v41 = vadd.f32 %v143_v33, %v142_v25 }
  0x3f   :  { %v150_v42 = vadd.f32 %v149_v34, %v148_v26  ;;  %v173_v43 = vrot.slane %v172_v35, 2  ;;  %v156_v44 = vadd.f32 %v155_v36, %v154_v28  ;;  %v179_v47 = vrot.slane %v178_v39, 2 }
  0x40   :  { %v162_v45 = vadd.f32 %v161_v37, %v160_v29  ;;  %v168_v46 = vadd.f32 %v167_v38, %v166_v30  ;;  %v139_v48 = vrot.slane %v138_v40, 1  ;;  %v145_v49 = vrot.slane %v144_v41, 1  ;;  %v949_v38 = vld [vmem:[#allocation9 + $0x30] sm:$0xff] }
  0x41   :  { %v151_v50 = vrot.slane %v150_v42, 1  ;;  %v174_v51 = vadd.f32 %v173_v43, %v172_v35  ;;  %v157_v52 = vrot.slane %v156_v44, 1  ;;  %v180_v55 = vadd.f32 %v179_v47, %v178_v39 }
  0x42   :  { %v163_v53 = vrot.slane %v162_v45, 1  ;;  %v169_v54 = vrot.slane %v168_v46, 1  ;;  %v140_v56 = vadd.f32 %v139_v48, %v138_v40  ;;  %v146_v57 = vadd.f32 %v145_v49, %v144_v41 }
  0x43   :  { %v152_v58 = vadd.f32 %v151_v50, %v150_v42  ;;  %v175_v59 = vrot.slane %v174_v51, 1  ;;  %v158_v62 = vadd.f32 %v157_v52, %v156_v44  ;;  %v181_v1 = vrot.slane %v180_v55, 1  ;;  %v952_v42 = vld [vmem:[#allocation9 + $0x38] sm:$0xff] }
  0x44   :  { %v164_v63 = vadd.f32 %v163_v53, %v162_v45  ;;  %v170_v12 = vadd.f32 %v169_v54, %v168_v46  ;;  %v183_v10 = vmul.f32 0.14285715, %v140_v56  ;;  %v184_v17 = vmul.f32 0.14285715, %v146_v57 }
  0x45   :  { %v176_v6 = vadd.f32 %v175_v59, %v174_v51  ;;  %v185_v18 = vmul.f32 0.14285715, %v152_v58  ;;  %v182_v19 = vadd.f32 %v181_v1, %v180_v55  ;;  %v186_v20 = vmul.f32 0.14285715, %v158_v62 }
  0x46   :  { %v187_v21 = vmul.f32 0.14285715, %v164_v63  ;;  %v188_v11 = vmul.f32 0.14285715, %v170_v12  ;;  %713 = vrsqrt.f32 %v183_v10  ;;  %v207_v24 = vrot.slane %v926_v60, 4 }
  0x47   :  { %v189_v22 = vmul.f32 0.14285715, %v176_v6  ;;  %v213_v25 = vrot.slane %v928_v61, 4  ;;  %v190_v26 = vmul.f32 0.14285715, %v182_v19  ;;  %715 = vrsqrt.f32 %v184_v17 }
  0x48   :  { %v219_v27 = vrot.slane %v930_v2, 4  ;;  %v225_v28 = vrot.slane %v932_v3, 4  ;;  %717 = vrsqrt.f32 %v185_v18  ;;  %v208_v29 = vadd.f32 %v207_v24, %v926_v60 }
  0x49   :  { %v214_v30 = vadd.f32 %v213_v25, %v928_v61  ;;  %v231_v31 = vrot.slane %v934_v5, 4  ;;  %719 = vrsqrt.f32 %v186_v20  ;;  %v237_v34 = vrot.slane %v936_v23, 4 }
  0x4a   :  { %v220_v32 = vadd.f32 %v219_v27, %v930_v2  ;;  %v226_v33 = vadd.f32 %v225_v28, %v932_v3  ;;  %721 = vrsqrt.f32 %v187_v21  ;;  %v209_v35 = vrot.slane %v208_v29, 2 }
  0x4b   :  { %v215_v36 = vrot.slane %v214_v30, 2  ;;  %v232_v37 = vadd.f32 %v231_v31, %v934_v5  ;;  %723 = vrsqrt.f32 %v188_v11  ;;  %v238_v41 = vadd.f32 %v237_v34, %v936_v23 }
  0x4c   :  { %v221_v39 = vrot.slane %v220_v32, 2  ;;  %v227_v40 = vrot.slane %v226_v33, 2  ;;  %725 = vrsqrt.f32 %v189_v22  ;;  %v210_v43 = vadd.f32 %v209_v35, %v208_v29 }
  0x4d   :  { %v216_v44 = vadd.f32 %v215_v36, %v214_v30  ;;  %v233_v45 = vrot.slane %v232_v37, 2  ;;  %727 = vrsqrt.f32 %v190_v26  ;;  %v239_v48 = vrot.slane %v238_v41, 2 }
  0x4e   :  { %v222_v46 = vadd.f32 %v221_v39, %v220_v32  ;;  %v228_v47 = vadd.f32 %v227_v40, %v226_v33  ;;  %v211_v49 = vrot.slane %v210_v43, 1  ;;  %v243_v52 = vrot.slane %v949_v38, 4 }
  0x4f   :  { %v217_v50 = vrot.slane %v216_v44, 1  ;;  %v234_v51 = vadd.f32 %v233_v45, %v232_v37  ;;  %v240_v55 = vadd.f32 %v239_v48, %v238_v41  ;;  %v249_v56 = vrot.slane %v952_v42, 4 }
  0x50   :  { %v223_v53 = vrot.slane %v222_v46, 1  ;;  %v229_v54 = vrot.slane %v228_v47, 1  ;;  %v714_v57 = vpop.eup %713  ;;  %v212_v58 = vadd.f32 %v211_v49, %v210_v43  ;;  %v244_v63 = vadd.f32 %v243_v52, %v949_v38 }
  0x51   :  { %v218_v59 = vadd.f32 %v217_v50, %v216_v44  ;;  %v235_v62 = vrot.slane %v234_v51, 1  ;;  %v716_v12 = vpop.eup %715  ;;  %v958_v1 = vmul.f32 %v714_v57, %v888_v7  ;;  %v241_v17 = vrot.slane %v240_v55, 1 }
  0x52   :  { %v224_v6 = vadd.f32 %v223_v53, %v222_v46  ;;  %v230_v10 = vadd.f32 %v229_v54, %v228_v47  ;;  %v718_v18 = vpop.eup %717  ;;  %v961_v19 = vmul.f32 %v716_v12, %v891_v8  ;;  %v245_v21 = vrot.slane %v244_v63, 2 }
  0x53   :  { %v236_v20 = vadd.f32 %v235_v62, %v234_v51  ;;  %v250_v11 = vadd.f32 %v249_v56, %v952_v42  ;;  %v720_v22 = vpop.eup %719  ;;  %v965_v24 = vmul.f32 %v718_v18, %v894_v9  ;;  %v553_v25 = vmul.f32 %v958_v1, %v958_v1 }
  0x54   :  { %v242_v7 = vadd.f32 %v241_v17, %v240_v55  ;;  %v255_v26 = vmul.f32 0.125, %v212_v58  ;;  %v722_v27 = vpop.eup %721  ;;  %v970_v28 = vmul.f32 %v720_v22, %v897_v13  ;;  %v554_v8 = vmul.f32 %v961_v19, %v961_v19 }
  0x55   :  { %v246_v29 = vadd.f32 %v245_v21, %v244_v63  ;;  %v251_v30 = vrot.slane %v250_v11, 2  ;;  %v724_v31 = vpop.eup %723  ;;  %v975_v32 = vmul.f32 %v722_v27, %v900_v14  ;;  %v555_v9 = vmul.f32 %v965_v24, %v965_v24 }
  0x56   :  { %v256_v33 = vmul.f32 0.125, %v218_v59  ;;  %v257_v34 = vmul.f32 0.125, %v224_v6  ;;  %v726_v35 = vpop.eup %725  ;;  %v980_v36 = vmul.f32 %v724_v31, %v903_v15  ;;  %v556_v13 = vmul.f32 %v970_v28, %v970_v28 }
  0x57   :  { %v561_v37 = vadd.f32 %v554_v8, %v553_v25  ;;  %v247_v39 = vrot.slane %v246_v29, 1  ;;  %v728_v40 = vpop.eup %727  ;;  %v985_v41 = vmul.f32 %v726_v35, %v905_v16  ;;  %v557_v14 = vmul.f32 %v975_v32, %v975_v32 }
  0x58   :  { %v252_v43 = vadd.f32 %v251_v30, %v250_v11  ;;  %v258_v44 = vmul.f32 0.125, %v230_v10  ;;  %v990_v45 = vmul.f32 %v728_v40, %v914_v4  ;;  %v558_v15 = vmul.f32 %v980_v36, %v980_v36 }
  0x59   :  { %v562_v46 = vadd.f32 %v561_v37, %v555_v9  ;;  %v248_v47 = vadd.f32 %v247_v39, %v246_v29  ;;  %v559_v48 = vmul.f32 %v985_v41, %v985_v41  ;;  %v259_v50 = vmul.f32 0.125, %v236_v20 }
  0x5a   :  { %v253_v49 = vrot.slane %v252_v43, 1  ;;  %v260_v16 = vmul.f32 0.125, %v242_v7  ;;  %v560_v51 = vmul.f32 %v990_v45, %v990_v45  ;;  %v999_v54 = vsub.f32 %v926_v60, %v255_v26 }
  0x5b   :  { %v563_v52 = vadd.f32 %v562_v46, %v556_v13  ;;  %v261_v53 = vmul.f32 0.125, %v248_v47  ;;  %v1002_v55 = vsub.f32 %v928_v61, %v256_v33  ;;  %v1005_v56 = vsub.f32 %v930_v2, %v257_v34 }
  0x5c   :  { %v254_v4 = vadd.f32 %v253_v49, %v252_v43  ;;  %v1008_v57 = vsub.f32 %v932_v3, %v258_v44  ;;  %v1011_v59 = vsub.f32 %v934_v5, %v259_v50  ;;  %v1014_v62 = vsub.f32 %v936_v23, %v260_v16 }
  0x5d   :  { %v564_v58 = vadd.f32 %v563_v52, %v557_v14  ;;  %v1017_v60 = vsub.f32 %v949_v38, %v261_v53  ;;  %v271_v61 = vmul.f32 %v999_v54, %v999_v54  ;;  %v272_v2 = vmul.f32 %v1002_v55, %v1002_v55 }
  0x5e   :  { %v262_v63 = vmul.f32 0.125, %v254_v4  ;;  %v273_v3 = vmul.f32 %v1005_v56, %v1005_v56  ;;  %v274_v5 = vmul.f32 %v1008_v57, %v1008_v57  ;;  %v275_v23 = vmul.f32 %v1011_v59, %v1011_v59 }
  0x5f   :  { %v565_v12 = vadd.f32 %v564_v58, %v558_v15  ;;  %v276_v38 = vmul.f32 %v1014_v62, %v1014_v62  ;;  %v277_v10 = vmul.f32 %v1017_v60, %v1017_v60  ;;  %v279_v17 = vrot.slane %v271_v61, 4 }
  0x60   :  { %v1032_v6 = vsub.f32 %v952_v42, %v262_v63  ;;  %v285_v18 = vrot.slane %v272_v2, 4  ;;  %v291_v21 = vrot.slane %v273_v3, 4  ;;  %v297_v11 = vrot.slane %v274_v5, 4 }
  0x61   :  { %v566_v20 = vadd.f32 %v565_v12, %v559_v48  ;;  %v303_v22 = vrot.slane %v275_v23, 4  ;;  %v280_v7 = vadd.f32 %v279_v17, %v271_v61  ;;  %v309_v27 = vrot.slane %v276_v38, 4 }
  0x62   :  { %v278_v25 = vmul.f32 %v1032_v6, %v1032_v6  ;;  %v286_v26 = vadd.f32 %v285_v18, %v272_v2  ;;  %v292_v29 = vadd.f32 %v291_v21, %v273_v3  ;;  %v298_v30 = vadd.f32 %v297_v11, %v274_v5 }
  0x63   :  { %v567_v8 = vadd.f32 %v566_v20, %v560_v51  ;;  %v304_v42 = vadd.f32 %v303_v22, %v275_v23  ;;  %v281_v31 = vrot.slane %v280_v7, 2  ;;  %v310_v33 = vadd.f32 %v309_v27, %v276_v38 }
  0x64   :  { %v287_v9 = vrot.slane %v286_v26, 2  ;;  %v315_v34 = vrot.slane %v277_v10, 4  ;;  %v293_v35 = vrot.slane %v292_v29, 2  ;;  %v299_v13 = vrot.slane %v298_v30, 2 }
  0x65   :  { %568 = vadd.xlane.f32.xlu0 %v567_v8  ;;  %v305_v37 = vrot.slane %v304_v42, 2  ;;  %v321_v39 = vrot.slane %v278_v25, 4  ;;  %v282_v40 = vadd.f32 %v281_v31, %v280_v7  ;;  %v311_v43 = vrot.slane %v310_v33, 2 }
  0x66   :  { %v288_v14 = vadd.f32 %v287_v9, %v286_v26  ;;  %v316_v44 = vadd.f32 %v315_v34, %v277_v10  ;;  %v294_v15 = vadd.f32 %v293_v35, %v292_v29  ;;  %v300_v46 = vadd.f32 %v299_v13, %v298_v30 }
  0x67   :  { %v306_v47 = vadd.f32 %v305_v37, %v304_v42  ;;  %v322_v48 = vadd.f32 %v321_v39, %v278_v25  ;;  %v283_v49 = vrot.slane %v282_v40, 1  ;;  %v312_v16 = vadd.f32 %v311_v43, %v310_v33 }
  0x68   :  { %v289_v50 = vrot.slane %v288_v14, 1  ;;  %v317_v51 = vrot.slane %v316_v44, 2  ;;  %v295_v52 = vrot.slane %v294_v15, 1  ;;  %v301_v53 = vrot.slane %v300_v46, 1 }
  0x69   :  { %v307_v4 = vrot.slane %v306_v47, 1  ;;  %v323_v58 = vrot.slane %v322_v48, 2  ;;  %v284_v63 = vadd.f32 %v283_v49, %v282_v40  ;;  %v313_v2 = vrot.slane %v312_v16, 1 }
  0x6a   :  { %v290_v61 = vadd.f32 %v289_v50, %v288_v14  ;;  %v318_v3 = vadd.f32 %v317_v51, %v316_v44  ;;  %v296_v12 = vadd.f32 %v295_v52, %v294_v15  ;;  %v302_v5 = vadd.f32 %v301_v53, %v300_v46 }
  0x6b   :  { %v308_v23 = vadd.f32 %v307_v4, %v306_v47  ;;  %v324_v38 = vadd.f32 %v323_v58, %v322_v48  ;;  %v314_v10 = vadd.f32 %v313_v2, %v312_v16  ;;  %v327_v18 = vmul.f32 0.14285715, %v284_v63 }
  0x6c   :  { %v319_v17 = vrot.slane %v318_v3, 1  ;;  %v328_v20 = vmul.f32 0.14285715, %v290_v61  ;;  %v329_v11 = vmul.f32 0.14285715, %v296_v12  ;;  %v353_v25 = vpack.c.bf16 %v961_v19, %v961_v19 }
  0x6d   :  { %v325_v21 = vrot.slane %v324_v38, 1  ;;  %v330_v22 = vmul.f32 0.14285715, %v302_v5  ;;  %v331_v26 = vmul.f32 0.14285715, %v308_v23  ;;  %729 = vrsqrt.f32 %v327_v18 }
  0x6e   :  { %v320_v7 = vadd.f32 %v319_v17, %v318_v3  ;;  %v332_v8 = vmul.f32 0.14285715, %v314_v10  ;;  %731 = vrsqrt.f32 %v328_v20  ;;  %400 = vmatprep.mubr.bf16.mxu0 %v353_v25  ;;  %v355_v29 = vpack.c.bf16 %v970_v28, %v970_v28 }
  0x6f   :  { %v326_v27 = vadd.f32 %v325_v21, %v324_v38  ;;  %733 = vrsqrt.f32 %v329_v11  ;;  %vm41_vm1 = vcmask 64512  }
  0x70   :  { %v333_v30 = vmul.f32 0.14285715, %v320_v7  ;;  %735 = vrsqrt.f32 %v330_v22  ;;  %440 = vmatprep.mubr.bf16.mxu1 %v355_v29  ;;  %42 = vst.msk [vmem:[#allocation2] sm:$0xff] %vm41_vm1, %v811_v0 }
  0x71   :  { %v334_v42 = vmul.f32 0.14285715, %v326_v27  ;;  %737 = vrsqrt.f32 %v331_v26 }
  0x72   :  { %739 = vrsqrt.f32 %v332_v8  ;;  %v359_v8 = vpack.c.bf16 %v990_v45, %v990_v45 }
  0x73   :  { %741 = vrsqrt.f32 %v333_v30  ;;  %v356_v30 = vpack.c.bf16 %v975_v32, %v975_v32 }
  0x74   :  { %743 = vrsqrt.f32 %v334_v42 }
  0x77   :  { %v730_v31 = vpop.eup %729 }
  0x78   :  { %v732_v9 = vpop.eup %731  ;;  %v343_v33 = vmul.f32 %v730_v31, %v999_v54  ;;  %v812_v31 = vmov 0  }
  0x79   :  { %v734_v34 = vpop.eup %733  ;;  %v344_v35 = vmul.f32 %v732_v9, %v1002_v55  ;;  %711 = vset.pattern.permute.xlu1 %v812_v31 }
  0x7a   :  { %v736_v13 = vpop.eup %735  ;;  %v345_v37 = vmul.f32 %v734_v34, %v1005_v56  ;;  %v573_v39 = vmul.f32 %v343_v33, %v343_v33  ;;  %v532_v40 = vmul.f32 %v343_v33, %v958_v1  ;;  %v360_v14 = vpack.c.bf16 %v343_v33, %v343_v33 }
  0x7b   :  { %v738_v43 = vpop.eup %737  ;;  %v346_v44 = vmul.f32 %v736_v13, %v1008_v57  ;;  %v574_v15 = vmul.f32 %v344_v35, %v344_v35  ;;  %v533_v46 = vmul.f32 %v344_v35, %v961_v19  ;;  %v361_v47 = vpack.c.bf16 %v344_v35, %v344_v35  ;;  %v572_v35 = vld [vmem:[#allocation5] sm:$0xff]  ;;  %v531_v13 = vld [vmem:[#allocation3] sm:$0xff] }
  0x7c   :  { %v740_v48 = vpop.eup %739  ;;  %v347_v54 = vmul.f32 %v738_v43, %v1011_v59  ;;  %v575_v49 = vmul.f32 %v345_v37, %v345_v37  ;;  %v534_v55 = vmul.f32 %v345_v37, %v965_v24  ;;  %v352_v19 = vpack.c.bf16 %v958_v1, %v958_v1 }
  0x7d   :  { %v742_v50 = vpop.eup %741  ;;  %v348_v56 = vmul.f32 %v740_v48, %v1014_v62  ;;  %v576_v16 = vmul.f32 %v346_v44, %v346_v44  ;;  %v581_v51 = vadd.f32 %v574_v15, %v573_v39  ;;  %368 = vmatprep.subr.bf16.mxu0 %v361_v47  ;;  %v535_v53 = vmul.f32 %v346_v44, %v970_v28 }
  0x7e   :  { %v744_v52 = vpop.eup %743  ;;  %v540_v57 = vadd.f32 %v533_v46, %v532_v40  ;;  %369 = vmatpush1.bf16.xpose.msra.mxu0 %v360_v14  ;;  %v349_v4 = vmul.f32 %v742_v50, %v1017_v60  ;;  %v577_v59 = vmul.f32 %v347_v54, %v347_v54  ;;  %v362_v63 = vpack.c.bf16 %v345_v37, %v345_v37 }
  0x7f   :  { %v582_v58 = vadd.f32 %v581_v51, %v575_v49  ;;  %v350_v61 = vmul.f32 %v744_v52, %v1032_v6  ;;  %v536_v62 = vmul.f32 %v347_v54, %v975_v32  ;;  %v363_v3 = vpack.c.bf16 %v346_v44, %v346_v44 }
  0x80   :  { %v541_v2 = vadd.f32 %v540_v57, %v534_v55  ;;  %v578_v12 = vmul.f32 %v348_v56, %v348_v56  ;;  %v365_v23 = vpack.c.bf16 %v348_v56, %v348_v56  ;;  %v357_v28 = vpack.c.bf16 %v980_v36, %v980_v36 }
  0x81   :  { %v583_v5 = vadd.f32 %v582_v58, %v576_v16  ;;  %v537_v38 = vmul.f32 %v348_v56, %v980_v36  ;;  %408 = vmatprep.subr.bf16.mxu1 %v363_v3  ;;  %v364_v60 = vpack.c.bf16 %v347_v54, %v347_v54  ;;  %v367_v10 = vpack.c.bf16 %v350_v61, %v350_v61 }
  0x82   :  { %v542_v1 = vadd.f32 %v541_v2, %v535_v53  ;;  %v579_v17 = vmul.f32 %v349_v4, %v349_v4  ;;  %409 = vmatpush1.bf16.xpose.msra.mxu1 %v362_v63  ;;  %448 = vmatprep.subr.bf16.mxu0 %v365_v23  ;;  %v538_v6 = vmul.f32 %v349_v4, %v985_v41  ;;  %v351_v63 = vld [vmem:[#allocation2] sm:$0xff]  ;;  %v637_v23 = vlaneseq }
  0x83   :  { %v584_v18 = vadd.f32 %v583_v5, %v577_v59  ;;  %488 = vmatprep.subr.bf16.mxu1 %v367_v10  ;;  %v580_v21 = vmul.f32 %v350_v61, %v350_v61  ;;  %v539_v22 = vmul.f32 %v350_v61, %v990_v45  ;;  %v354_v36 = vpack.c.bf16 %v965_v24, %v965_v24  ;;  %v552_v45 = vld [vmem:[#allocation4] sm:$0xff] }
  0x84   :  { %v543_v20 = vadd.f32 %v542_v1, %v536_v62  ;;  %v366_v26 = vpack.c.bf16 %v349_v4, %v349_v4  ;;  %v358_v24 = vpack.c.bf16 %v985_v41, %v985_v41 }
  0x85   :  { %v585_v11 = vadd.f32 %v584_v18, %v578_v12  ;;  %401 = vmatmul.mubr.bf16.vlgmr.msra.gmra.mrb[0].mxu0 %v352_v19 }
  0x86   :  { %v544_v25 = vadd.f32 %v543_v20, %v537_v38  ;;  %449 = vmatpush1.bf16.xpose.msra.mxu0 %v364_v60  ;;  %480 = vmatprep.mubr.bf16.mxu0 %v357_v28  ;;  %v638_v28 = vshrl.u32 %v637_v23, 7 }
  0x87   :  { %v586_v7 = vadd.f32 %v585_v11, %v579_v17 }
  0x88   :  { %v545_v27 = vadd.f32 %v544_v25, %v538_v6  ;;  %v639_v38 = vsub.s32 0, %v638_v28 }
  0x89   :  { %v587_v29 = vadd.f32 %v586_v7, %v580_v21  ;;  %441 = vmatmul.mubr.bf16.vlgmr.msra.gmra.mrb[0].mxu1 %v354_v36 }
  0x8a   :  { %v546_v42 = vadd.f32 %v545_v27, %v539_v22  ;;  %489 = vmatpush1.bf16.xpose.msra.mxu1 %v366_v26  ;;  %520 = vmatprep.mubr.bf16.mxu1 %v359_v8 }
  0x8b   :  { %588 = vadd.xlane.f32.xlu0 %v587_v29 }
  0x8c   :  { %547 = vadd.xlane.f32.xlu1 %v546_v42 }
  0x8d   :  { %481 = vmatmul.mubr.bf16.vlgmr.msra.gmra.mrb[4].mxu0 %v356_v30 }
  0x91   :  { %521 = vmatmul.mubr.bf16.vlgmr.msra.gmra.mrb[4].mxu1 %v358_v24 }
  0xf2   :  { %v569_v9 = vpop.xlane.xlu0 %568 }
  0xf3   :  { %v570_v32 = vadd.f32 %v569_v9, %v552_v45 }
  0xf5   :  { %571 = vst.msk [vmem:[#allocation4] sm:$0xff] %vm43_vm0, %v570_v32 }
  0xfc   :  { %v595_v33 = vld [vmem:[#allocation4] sm:$0xff] }
  0xfd   :  { %745 = vrsqrt.f32 %v595_v33 }
 0x107   :  { %v746_v34 = vpop.eup %745 }
 0x108   :  { %634 = vperm.xlu1 %711, %v746_v34  }
 0x118   :  { %v589_v37 = vpop.xlane.xlu0 %588 }
 0x119   :  { %v590_v41 = vadd.f32 %v589_v37, %v572_v35  ;;  %v548_v39 = vpop.xlane.xlu1 %547 }
 0x11a   :  { %v549_v40 = vadd.f32 %v548_v39, %v531_v13 }
 0x11b   :  { %591 = vst.msk [vmem:[#allocation5] sm:$0xff] %vm43_vm0, %v590_v41 }
 0x11c   :  { %551 = vst.msk [vmem:[#allocation3] sm:$0xff] %vm43_vm0, %v549_v40 }
 0x122   :  { %v597_v0 = vld [vmem:[#allocation5] sm:$0xff] }
 0x123   :  { %747 = vrsqrt.f32 %v597_v0  ;;  %v643_v14 = vld [vmem:[#allocation3] sm:$0xff] }
 0x124   :  { %v644_v43 = vmul.f32 %v746_v34, %v643_v14 }
 0x12d   :  { %v748_v44 = vpop.eup %747 }
 0x12e   :  { %600 = vxpose.xlu0.b32.start.end [1/1] (short) (narrow) %v748_v44, 8  ;;  %v645_v15 = vmul.f32 %v748_v44, %v644_v43 }
 0x130   :  { %v646_v46 = vsel %vm43_vm0, %v645_v15, 0.0  ;;  %v656_v47 = vmul.f32 %v645_v15, %v645_v15 }
 0x131   :  { %647 = vadd.xlane.f32.xlu1 %v646_v46 }
 0x132   :  { %v657_v49 = vsel %vm43_vm0, %v656_v47, 0.0 }
 0x157   :  { %712 = vset.pattern.permute.xlu0 %v812_v31 }
 0x158   :  { %v402_v48 = vpop.f32.mrb[0].mxu0 }
 0x159   :  { %v404_v54 = vpop.f32.mrb[1].mxu0 }
 0x15a   :  { %v405_v55 = vpop.f32.mrb[2].mxu0 }
 0x15b   :  { %658 = vadd.xlane.f32.xlu0 %v657_v49  ;;  %v406_v50 = vpop.f32.mrb[3].mxu0 }
 0x15c   :  { %v442_v56 = vpop.f32.mrb[0].mxu1 }
 0x15d   :  { %v443_v16 = vadd.f32 %v442_v56, %v402_v48  ;;  %v444_v51 = vpop.f32.mrb[1].mxu1 }
 0x15e   :  { %v445_v52 = vpop.f32.mrb[2].mxu1 }
 0x15f   :  { %v446_v53 = vpop.f32.mrb[3].mxu1 }
 0x160   :  { %v482_v57 = vpop.f32.mrb[4].mxu0 }
 0x161   :  { %v483_v19 = vadd.f32 %v482_v57, %v443_v16  ;;  %v484_v4 = vpop.f32.mrb[5].mxu0 }
 0x162   :  { %v485_v59 = vpop.f32.mrb[6].mxu0 }
 0x163   :  { %v486_v58 = vpop.f32.mrb[7].mxu0 }
 0x164   :  { %v522_v61 = vpop.f32.mrb[4].mxu1 }
 0x165   :  { %v523_v62 = vadd.f32 %v522_v61, %v483_v19  ;;  %v524_v2 = vpop.f32.mrb[5].mxu1 }
 0x166   :  { %v525_v3 = vpop.f32.mrb[6].mxu1 }
 0x167   :  { %v528_v12 = vadd.f32 %v523_v62, %v351_v63  ;;  %v526_v5 = vpop.f32.mrb[7].mxu1 }
 0x169   :  { %530 = vst.msk [vmem:[#allocation2] sm:$0xff] %vm41_vm1, %v528_v12 }
 0x170   :  { %v599_v18 = vld [vmem:[#allocation2] sm:$0xff] }
 0x187   :  { %v635_v10 = vpop.permute.xlu1 %634 }
 0x1ae   :  { %v616_v1 = vpop.trf.xlu0 }
 0x1af   :  { %v640_v60 = vrot.slane %v616_v1, %v639_v38 }
 0x1b1   :  { %v641_v17 = vmul.f32 %v640_v60, %v635_v10 }
 0x1b3   :  { %v642_v6 = vmul.f32 %v641_v17, %v599_v18 }
 0x1b5   :  { %v667_v20 = vmul.f32 %v642_v6, %v642_v6 }
 0x1b7   :  { %v668_v21 = vsel %vm41_vm1, %v667_v20, 0.0 }
 0x1b8   :  { %669 = vadd.xlane.f32.xlu1 %v668_v21 }
 0x1be   :  { %v648_v11 = vpop.xlane.xlu1 %647 }
 0x1bf   :  { %v649_v22 = vrot.slane %v648_v11, 4 }
 0x1c1   :  { %v650_v25 = vadd.f32 %v649_v22, %v648_v11 }
 0x1c3   :  { %v651_v36 = vrot.slane %v650_v25, 2 }
 0x1c5   :  { %v652_v7 = vadd.f32 %v651_v36, %v650_v25 }
 0x1c7   :  { %v653_v26 = vrot.slane %v652_v7, 1 }
 0x1c9   :  { %v654_v27 = vadd.f32 %v653_v26, %v652_v7 }
 0x1cb   :  { %700 = vpush %v654_v27 }
 0x1e8   :  { %v659_v8 = vpop.xlane.xlu0 %658 }
 0x1e9   :  { %v660_v29 = vrot.slane %v659_v8, 4 }
 0x1eb   :  { %v661_v30 = vadd.f32 %v660_v29, %v659_v8 }
 0x1ed   :  { %v662_v42 = vrot.slane %v661_v30, 2 }
 0x1ef   :  { %v663_v24 = vadd.f32 %v662_v42, %v661_v30 }
 0x1f1   :  { %v664_v31 = vrot.slane %v663_v24, 1 }
 0x1f3   :  { %v665_v45 = vadd.f32 %v664_v31, %v663_v24 }
 0x1f5   :  { %702 = vpush %v665_v45 }
 0x1fc   :  { %s701_s1 = spop %700 }
 0x1fd   :  { %s679_s4 = ssub.f32 8.0, %s701_s1 }
 0x1ff   :  { %s680_s8 = smul.f32 0.125, %s679_s4 }
 0x226   :  { %s703_s5 = spop %702 }
 0x245   :  { %v670_v9 = vpop.xlane.xlu1 %669 }
 0x246   :  { %v671_v32 = vrot.slane %v670_v9, 4 }
 0x248   :  { %v672_v33 = vadd.f32 %v671_v32, %v670_v9 }
 0x24a   :  { %v673_v34 = vrot.slane %v672_v33, 2 }
 0x24c   :  { %v674_v35 = vadd.f32 %v673_v34, %v672_v33 }
 0x24e   :  { %v675_v13 = vrot.slane %v674_v35, 1 }
 0x250   :  { %v676_v37 = vadd.f32 %v675_v13, %v674_v35 }
 0x252   :  { %704 = vpush %v676_v37 }
 0x283   :  { %s705_s6 = spop %704 }
 0x284   :  { %s678_s7 = ssub.f32 %s705_s6, %s703_s5 }
 0x286   :  { %s681_s9 = smul.f32 0.025, %s678_s7 }
 0x288   :  { %s682_s10 = sadd.f32 %s681_s9, %s680_s8 }
 0x28a   :  { %684 = sst [smem:[#allocation11]] %s682_s10 }
 0x28b   :  { %802 = shalt.err (!%p799_p4)
}
 0x28c   :  { %s813_s18 = smov [#allocation11]  }
 0x28d   :  { %692 = dma.smem_to_hbm %s813_s18, 16, %s1093_s2, [#allocation8]  }
 0x28e   :  { %807 = dma.done.wait [#allocation8], 16  }
 0x28f   :  { %808 = vsyncadd [#allocation8], 4294967280 }
 0x290   :  { %696 = sfence }
 0x291   :  { %697 = vsyncpa [#allocation7], 1 }
 0x292   :  { %698 = vsyncpa [#allocation10], 1 }
 0x293   :  { %699 = vsyncpa [#allocation8], 1 }

</bundles_post_ra>
